<compile_context>
chip_gen: v5e
topology: v5e:2x2
jax: 0.10.0
libtpu: 0.0.40
codegen_flags: <defaults>
</compile_context>

<pallas_src>
import jax
import jax.numpy as jnp
from jax.experimental import pallas as pl
from jax.experimental.pallas import tpu as pltpu


def mlp_kernel(xT_ref, w1_ref, b1_ref, w2_ref, b2_ref, w3t_ref, b3_ref, o_ref):
    xT = xT_ref[...]                      # (2, tm)   batch on lanes
    w1 = w1_ref[...]                      # (C, 2)    PyTorch layout

    # Layer 1: K = 2 -> skip the MXU, two broadcast FMAs on the VPU.
    h1 = w1[:, 0:1] * xT[0:1, :] + w1[:, 1:2] * xT[1:2, :] + b1_ref[...]   # (C, tm)
    z1 = jnp.maximum(h1, 0.0)

    # Layer 2: C x C on the MXU; batch (tm) is the wide output/streaming axis.
    h2 = jnp.dot(w2_ref[...], z1, preferred_element_type=jnp.float32) + b2_ref[...]
    z2 = jnp.maximum(h2, 0.0)                                              # (C, tm)

    # Layer 3: output width 1 -> multiply + sublane reduction (XLU), no MXU.
    logit = jnp.sum(w3t_ref[...] * z2, axis=0, keepdims=True) + b3_ref[0, 0]  # (1, tm)

    # Lane-dense (1, tm) store: unmasked vst.
    o_ref[...] = jax.nn.sigmoid(logit)


def mlp_forward(x, params, *, tm=None):
    """x: (N, 2) float32 -> (N, 1) float32."""
    w1, b1, w2, b2, w3, b3 = params
    N = x.shape[0]
    C = w1.shape[0]

    if tm is None:
        # >=128 lanes (dense vregs), cap the tile so the (C, tm) f32 intermediates
        # stay tiny even on v7x's 64 MiB VMEM, and aim for >=2 grid steps so both
        # v7x TensorCores get work (no-op on v5e/v6e).
        tm = max(128, min(8192, pl.next_power_of_2(pl.cdiv(N, 2))))

    n_pad = pl.cdiv(N, tm) * tm
    grid = (n_pad // tm,)

    # Layout plumbing in the wrapper (cheap): batch onto lanes, zero-pad tail.
    xT = jnp.zeros((2, n_pad), jnp.float32).at[:, :N].set(x.T)

    yT = pl.pallas_call(
        mlp_kernel,
        out_shape=jax.ShapeDtypeStruct((1, n_pad), jnp.float32),
        grid_spec=pltpu.PrefetchScalarGridSpec(
            num_scalar_prefetch=0,
            grid=grid,
            in_specs=[
                pl.BlockSpec((2, tm), lambda i: (0, i)),      # x^T tile (batch on lanes)
                pl.BlockSpec((C, 2), lambda i: (0, 0)),       # w1 (resident)
                pl.BlockSpec((C, 1), lambda i: (0, 0)),       # b1 (column)
                pl.BlockSpec((C, C), lambda i: (0, 0)),       # w2 (resident)
                pl.BlockSpec((C, 1), lambda i: (0, 0)),       # b2
                pl.BlockSpec((C, 1), lambda i: (0, 0)),       # w3^T (column)
                pl.BlockSpec(memory_space=pltpu.MemorySpace.SMEM),  # b3 scalar
            ],
            out_specs=pl.BlockSpec((1, tm), lambda i: (0, i)),  # lane-dense output
        ),
        compiler_params=pltpu.CompilerParams(
            dimension_semantics=("parallel",)),
    )(xT, w1, b1.reshape(C, 1), w2, b2.reshape(C, 1), w3.T, b3.reshape(1, 1))

    return yT[0, :N].reshape(N, 1)


def init_params(key, channels):
    """Deterministic init mirroring torch.nn.Linear: W (out,in), b (out,), U(+-1/sqrt(fan_in))."""
    def linear(k, fan_in, fan_out):
        kw, kb = jax.random.split(k)
        bound = 1.0 / jnp.sqrt(fan_in)
        w = jax.random.uniform(kw, (fan_out, fan_in), jnp.float32, -bound, bound)
        b = jax.random.uniform(kb, (fan_out,), jnp.float32, -bound, bound)
        return w, b

    k1, k2, k3 = jax.random.split(key, 3)
    w1, b1 = linear(k1, 2, channels)
    w2, b2 = linear(k2, channels, channels)
    w3, b3 = linear(k3, channels, 1)
    return (w1, b1, w2, b2, w3, b3)


if __name__ == "__main__":
    key = jax.random.PRNGKey(0)
    kx, kp = jax.random.split(key)

    channels = 32
    N = 256  # batch; tm=128 -> 2 grid steps (keeps both v7x TCs busy)

    x = jax.random.normal(kx, (N, 2), dtype=jnp.float32)
    params = init_params(kp, channels)

    y = mlp_forward(x, params, tm=128)
    jax.block_until_ready(y)

    # Reference check in plain JAX (PyTorch Linear convention: y = x @ W^T + b).
    w1, b1, w2, b2, w3, b3 = params
    z1 = jnp.maximum(x @ w1.T + b1, 0.0)
    z2 = jnp.maximum(z1 @ w2.T + b2, 0.0)
    y_ref = jax.nn.sigmoid(z2 @ w3.T + b3)

    assert y.shape == (N, 1)
    assert jnp.allclose(y, y_ref, atol=2e-5, rtol=2e-5), float(jnp.max(jnp.abs(y - y_ref)))

    print("KERNEL_OK")
</pallas_src>

<mosaic_0001>
module attributes {stable_mosaic.version = 11 : i64} {
  func.func @mlp_kernel(%arg0: i32, %arg1: memref<2x128xf32, #tpu.memory_space<vmem>>, %arg2: memref<32x2xf32, #tpu.memory_space<vmem>>, %arg3: memref<32x1xf32, #tpu.memory_space<vmem>>, %arg4: memref<32x32xf32, #tpu.memory_space<vmem>>, %arg5: memref<32x1xf32, #tpu.memory_space<vmem>>, %arg6: memref<32x1xf32, #tpu.memory_space<vmem>>, %arg7: memref<1x1xf32, #tpu.memory_space<smem>>, %arg8: memref<1x128xf32, #tpu.memory_space<vmem>>) attributes {dimension_semantics = [#tpu.dimension_semantics<parallel>], iteration_bounds = array<i64: 2>, scalar_prefetch = 0 : i64, scratch_operands = 0 : i64, tpu.core_type = #tpu.core_type<tc>, window_params = [{transform_indices = @transform_0, window_bounds = array<i64: 2, 128>}, {pipeline_mode = #tpu.pipeline_mode<synchronous>, transform_indices = @transform_1, window_bounds = array<i64: 32, 2>}, {pipeline_mode = #tpu.pipeline_mode<synchronous>, transform_indices = @transform_2, window_bounds = array<i64: 32, 1>}, {pipeline_mode = #tpu.pipeline_mode<synchronous>, transform_indices = @transform_3, window_bounds = array<i64: 32, 32>}, {pipeline_mode = #tpu.pipeline_mode<synchronous>, transform_indices = @transform_4, window_bounds = array<i64: 32, 1>}, {pipeline_mode = #tpu.pipeline_mode<synchronous>, transform_indices = @transform_5, window_bounds = array<i64: 32, 1>}, {transform_indices = @transform_6, window_bounds = array<i64: 1, 1>}, {transform_indices = @transform_7, window_bounds = array<i64: 1, 128>}]} {
    %c0 = arith.constant 0 : index
    %c0_0 = arith.constant 0 : index
    %0 = vector.load %arg1[%c0, %c0_0] : memref<2x128xf32, #tpu.memory_space<vmem>>, vector<2x128xf32>
    %c0_1 = arith.constant 0 : index
    %c0_2 = arith.constant 0 : index
    %1 = vector.load %arg2[%c0_1, %c0_2] : memref<32x2xf32, #tpu.memory_space<vmem>>, vector<32x2xf32>
    %2 = vector.extract_strided_slice %1 {offsets = [0, 0], sizes = [32, 1], strides = [1, 1]} : vector<32x2xf32> to vector<32x1xf32>
    %3 = vector.extract_strided_slice %0 {offsets = [0, 0], sizes = [1, 128], strides = [1, 1]} : vector<2x128xf32> to vector<1x128xf32>
    %4 = vector.broadcast %2 : vector<32x1xf32> to vector<32x128xf32>
    %5 = vector.broadcast %3 : vector<1x128xf32> to vector<32x128xf32>
    %6 = arith.mulf %4, %5 : vector<32x128xf32>
    %7 = vector.extract_strided_slice %1 {offsets = [0, 1], sizes = [32, 1], strides = [1, 1]} : vector<32x2xf32> to vector<32x1xf32>
    %8 = vector.extract_strided_slice %0 {offsets = [1, 0], sizes = [1, 128], strides = [1, 1]} : vector<2x128xf32> to vector<1x128xf32>
    %9 = vector.broadcast %7 : vector<32x1xf32> to vector<32x128xf32>
    %10 = vector.broadcast %8 : vector<1x128xf32> to vector<32x128xf32>
    %11 = arith.mulf %9, %10 : vector<32x128xf32>
    %12 = arith.addf %6, %11 : vector<32x128xf32>
    %c0_3 = arith.constant 0 : index
    %c0_4 = arith.constant 0 : index
    %13 = vector.load %arg3[%c0_3, %c0_4] : memref<32x1xf32, #tpu.memory_space<vmem>>, vector<32x1xf32>
    %14 = vector.broadcast %13 : vector<32x1xf32> to vector<32x128xf32>
    %15 = arith.addf %12, %14 : vector<32x128xf32>
    %cst = arith.constant 0.000000e+00 : f32
    %16 = vector.broadcast %cst : f32 to vector<32x128xf32>
    %17 = arith.maximumf %15, %16 : vector<32x128xf32>
    %c0_5 = arith.constant 0 : index
    %c0_6 = arith.constant 0 : index
    %18 = vector.load %arg4[%c0_5, %c0_6] : memref<32x32xf32, #tpu.memory_space<vmem>>, vector<32x32xf32>
    %cst_7 = arith.constant dense<0.000000e+00> : vector<32x128xf32>
    %19 = tpu.matmul %18, %17, %cst_7 {dimension_numbers = #tpu.dot_dimension_numbers<[1], [0], [0], [1], [0, 0, 1, 1], [], []>} : vector<32x32xf32>, vector<32x128xf32>, vector<32x128xf32> -> vector<32x128xf32>
    %c0_8 = arith.constant 0 : index
    %c0_9 = arith.constant 0 : index
    %20 = vector.load %arg5[%c0_8, %c0_9] : memref<32x1xf32, #tpu.memory_space<vmem>>, vector<32x1xf32>
    %21 = vector.broadcast %20 : vector<32x1xf32> to vector<32x128xf32>
    %22 = arith.addf %19, %21 : vector<32x128xf32>
    %cst_10 = arith.constant 0.000000e+00 : f32
    %23 = vector.broadcast %cst_10 : f32 to vector<32x128xf32>
    %24 = arith.maximumf %22, %23 : vector<32x128xf32>
    %c0_11 = arith.constant 0 : index
    %c0_12 = arith.constant 0 : index
    %25 = vector.load %arg6[%c0_11, %c0_12] : memref<32x1xf32, #tpu.memory_space<vmem>>, vector<32x1xf32>
    %26 = vector.broadcast %25 : vector<32x1xf32> to vector<32x128xf32>
    %27 = arith.mulf %26, %24 : vector<32x128xf32>
    %cst_13 = arith.constant dense<0.000000e+00> : vector<128xf32>
    %28 = vector.multi_reduction <add>, %27, %cst_13 [0] : vector<32x128xf32> to vector<128xf32>
    %29 = vector.shape_cast %28 : vector<128xf32> to vector<1x128xf32>
    %c0_14 = arith.constant 0 : index
    %c0_15 = arith.constant 0 : index
    %30 = memref.load %arg7[%c0_14, %c0_15] : memref<1x1xf32, #tpu.memory_space<smem>>
    %31 = vector.broadcast %30 : f32 to vector<1x128xf32>
    %32 = arith.addf %29, %31 : vector<1x128xf32>
    %33 = arith.negf %32 : vector<1x128xf32>
    %34 = math.exp %33 : vector<1x128xf32>
    %cst_16 = arith.constant 1.000000e+00 : f32
    %35 = vector.broadcast %cst_16 : f32 to vector<1x128xf32>
    %36 = arith.addf %35, %34 : vector<1x128xf32>
    %37 = arith.divf %35, %36 : vector<1x128xf32>
    %c0_17 = arith.constant 0 : index
    %c0_18 = arith.constant 0 : index
    %38 = vector.load %arg8[%c0_17, %c0_18] : memref<1x128xf32, #tpu.memory_space<vmem>>, vector<1x128xf32>
    tpu.vector_store %arg8[%c0_17, %c0_18], %37 {strides = array<i32>} : memref<1x128xf32, #tpu.memory_space<vmem>>, vector<1x128xf32>,
    return
  }
  func.func @transform_0(%arg0: i32) -> (i32, i32) {
    %c0_i32 = arith.constant 0 : i32
    %c0_i32_0 = arith.constant 0 : i32
    return %c0_i32, %arg0 : i32, i32
  }
  func.func @transform_1(%arg0: i32) -> (i32, i32) {
    %c0_i32 = arith.constant 0 : i32
    %c0_i32_0 = arith.constant 0 : i32
    %c0_i32_1 = arith.constant 0 : i32
    return %c0_i32, %c0_i32_0 : i32, i32
  }
  func.func @transform_2(%arg0: i32) -> (i32, i32) {
    %c0_i32 = arith.constant 0 : i32
    %c0_i32_0 = arith.constant 0 : i32
    %c0_i32_1 = arith.constant 0 : i32
    return %c0_i32, %c0_i32_0 : i32, i32
  }
  func.func @transform_3(%arg0: i32) -> (i32, i32) {
    %c0_i32 = arith.constant 0 : i32
    %c0_i32_0 = arith.constant 0 : i32
    %c0_i32_1 = arith.constant 0 : i32
    return %c0_i32, %c0_i32_0 : i32, i32
  }
  func.func @transform_4(%arg0: i32) -> (i32, i32) {
    %c0_i32 = arith.constant 0 : i32
    %c0_i32_0 = arith.constant 0 : i32
    %c0_i32_1 = arith.constant 0 : i32
    return %c0_i32, %c0_i32_0 : i32, i32
  }
  func.func @transform_5(%arg0: i32) -> (i32, i32) {
    %c0_i32 = arith.constant 0 : i32
    %c0_i32_0 = arith.constant 0 : i32
    %c0_i32_1 = arith.constant 0 : i32
    return %c0_i32, %c0_i32_0 : i32, i32
  }
  func.func @transform_6(%arg0: i32) -> (i32, i32) {
    %c0_i32 = arith.constant 0 : i32
    %c0_i32_0 = arith.constant 0 : i32
    %c0_i32_1 = arith.constant 0 : i32
    return %c0_i32, %c0_i32_0 : i32, i32
  }
  func.func @transform_7(%arg0: i32) -> (i32, i32) {
    %c0_i32 = arith.constant 0 : i32
    %c0_i32_0 = arith.constant 0 : i32
    return %c0_i32, %arg0 : i32, i32
  }
}

</mosaic_0001>

<bundles_post_ra>
// kernel: tpu_custom_call.1
= control target key start
LH: loop header
LB: loop body
LE: loop exit
PB: predicated region body
PF: predicated region fallthrough
CT: control target
= control target key end

     0   :  { %s895_s0 = inlined_call_operand.vmem [shape: f32[2,256], index: 0, kind: input, shape index: {}]   ;;  %s896_s1 = inlined_call_operand.vmem [shape: f32[32,2], index: 1, kind: input, shape index: {}]   ;;  %s897_s2 = inlined_call_operand.vmem [shape: f32[32,1], index: 2, kind: input, shape index: {}]   ;;  %s898_s3 = inlined_call_operand.vmem [shape: f32[32,32], index: 3, kind: input, shape index: {}]   ;;  %s899_s4 = inlined_call_operand.vmem [shape: f32[32,1], index: 4, kind: input, shape index: {}]   ;;  %s900_s5 = inlined_call_operand.vmem [shape: f32[32,1], index: 5, kind: input, shape index: {}]   ;;  %s901_s6 = inlined_call_operand.<no memory space> [shape: f32[1,1], index: 6, kind: input, shape index: {}]   ;;  %s902_s7 = inlined_call_operand.hbm [shape: f32[1,256], index: 7, kind: output, shape index: {}]  }
   0x1   :  { %12 = sst [smem:[#allocation2]] %s901_s6 }
   0x2   :  { %13 = vsyncpa [#allocation4], 0 }
   0x3   :  { %15 = vsyncpa [#allocation4 + $0x1], 0  ;;  %s750_s26 = smov 0   ;;  %s752_s27 = smov 0  }
   0x4   :  { %s754_s28 = smov 0   ;;  %s756_s29 = smov 0  }
   0x5 LB: > { %s771_s6 = sadd.s32 4294967295, %s703_s29   ;;  %s563_s30 = sadd.s32 4294967294, %s703_s29   ;;  %s703_s29 = sphi %s756_s29, %s908_s29   ;;  %s699_s28 = sphi %s754_s28, %s907_s28   ;;  %s695_s27 = sphi %s752_s27, %s906_s27   ;;  %s691_s26 = sphi %s750_s26, %s905_s26  }
   0x6   : > { %s775_s8 = sadd.s32 1, %s703_s29   ;;  %s180_s9 = sadd.s32 1, %s699_s28 }
   0x7   : > { %s177_s10 = ssub.s32 %s703_s29, %s775_s8  ;;  %p190_p0 = scmp.ne.s32.totalorder %s699_s28, %s695_s27 }
   0x8   : > { %p178_p1 = scmp.eq.s32.totalorder %s177_s10, 0  ;;  %p191_p2 = scmp.eq.s32.totalorder %s771_s6, 1 }
   0x9   : > { %p196_p3 = scmp.ne.s32.totalorder %s695_s27, %s691_s26  ;;  %p197_p4 = scmp.eq.s32.totalorder %s563_s30, 1 }
   0xa   : > { %s786_s11 = scalar_select %p178_p1, %s699_s28, %s180_s9  }
   0xb   : > { %p788_p5 = por %p191_p2, %p190_p0  ;;  %p792_p6 = por %p197_p4, %p196_p3 }
   0xc   : > { %p566_p7 = scmp.ge.s32.totalorder %s703_s29, 1  ;;  %p240_p8 = scmp.lt.s32.totalorder %s703_s29, 3 }
   0xe   : > { %p241_p9 = pnand %p566_p7, %p240_p8 }
   0xf   : > { %p270_p10 = scmp.lt.s32.totalorder (!%p241_p9), %s771_s6, 1  ;;  %s472_s14 = sld [smem:[#allocation2]] (!%p241_p9) }
  0x10   : > { %244 = sbr.rel (%p241_p9) target bundleno = 363 (0x16b), region = 48  ;;  %s268_s15 = sand.u32 (!%p241_p9), 1, %s695_s27  }
  0x11   : > { %s504_s18 = scalar_lea.hbm (!%p241_p9), %s902_s7, %s771_s6  ;;  %s269_s19 = scalar_lea.vmem (!%p241_p9), [#allocation3], %s268_s15 }
  0x12   : > { %s508_s21 = sshll.u32 (!%p241_p9), %s504_s18, 4  ;;  %s496_s22 = scalar_lea.sflag (!%p241_p9), [#allocation4], %s268_s15  ;;  %s509_s21 = int_to_ptr.hbm [resolvable:$true] %s508_s21 }
  0x13   : > { %s661_s30 = scalar_lea.hbm (!%p241_p9), %s902_s7, 2 }
  0x15   : > { %v278_v0 = vld [vmem:[%s896_s1 + $0x18] sm:$0xff]  ;;  %v277_v1 = vld [vmem:[%s896_s1 + $0x10] sm:$0xff]  ;;  %v276_v2 = vld [vmem:[%s896_s1 + $0x8] sm:$0xff]  ;;  %v705_v3 = vmov 0   ;;  %v706_v4 = vmov 1   ;;  %s271_s16 = scalar_select %p270_p10, %s771_s6, 1 }
  0x16   : > { %632 = vset.pattern.permute.xlu2 %v705_v3  ;;  %630 = vset.pattern.permute.xlu1 %v705_v3  ;;  %v275_v5 = vld [vmem:[%s896_s1] sm:$0xff]  ;;  %v332_v6 = vld [vmem:[%s897_s2 + $0x18] sm:$0xff]  ;;  %v331_v7 = vld [vmem:[%s897_s2 + $0x10] sm:$0xff]  ;;  %vm389_vm0 = vcmask 261120   ;;  %s655_s6 = sshra.s32 %s509_s21, 4  ;;  %s656_s6 = int_to_ptr.hbm [resolvable:$true] %s655_s6 }
  0x17   : > { %628 = vset.pattern.permute.xlu0 %v705_v3  ;;  %291 = vperm.xlu1 %630, %v277_v1   ;;  %v329_v8 = vld [vmem:[%s897_s2] sm:$0xff]  ;;  %v330_v9 = vld [vmem:[%s897_s2 + $0x8] sm:$0xff]  ;;  %v367_v13 = vld [vmem:[%s899_s4 + $0x10] sm:$0xff]  ;;  %s567_s17 = sshll.u32 %s271_s16, 1  ;;  %s657_s23 = scalar_lea.hbm %s656_s6, 1 }
  0x18   : > { %296 = vperm.xlu0 %628, %v278_v0   ;;  %286 = vperm.xlu2 %632, %v276_v2   ;;  %v365_v10 = vld [vmem:[%s899_s4] sm:$0xff]  ;;  %v366_v12 = vld [vmem:[%s899_s4 + $0x8] sm:$0xff]  ;;  %v438_v14 = vld [vmem:[%s900_s5 + $0x18] sm:$0xff]  ;;  %s273_s20 = scalar_lea.vmem %s895_s0, %s567_s17  ;;  %p658_p11 = scmp.ne.s32.totalorder %s656_s6, %s657_s23 }
  0x19   : > { %v435_v11 = vld [vmem:[%s900_s5] sm:$0xff]  ;;  %v368_v15 = vld [vmem:[%s899_s4 + $0x18] sm:$0xff]  ;;  %v436_v16 = vld [vmem:[%s900_s5 + $0x8] sm:$0xff]  ;;  %p662_p0 = scmp.lt.s32.totalorder %s656_s6, %s902_s7  ;;  %p663_p1 = scmp.lt.s32.totalorder %s661_s30, %s657_s23 }
  0x1a   : > { %v437_v17 = vld [vmem:[%s900_s5 + $0x10] sm:$0xff]  ;;  %v274_v24 = vld [vmem:[%s273_s20] sm:$0x3]  ;;  %v362_v54 = vld [vmem:[%s898_s3 + $0x8] sm:$0xff]  ;;  %s506_s20 = sshll.u32 %s269_s19, 4  ;;  %p659_p12 = pnand %p658_p11, %p788_p5  ;;  %s507_s20 = int_to_ptr.vmem [resolvable:$true] %s506_s20 }
  0x1b   : > { %v320_v25 = vperm.slane %v274_v24, 1  ;;  %v299_v26 = vperm.slane %v274_v24, 0  ;;  %v361_v53 = vld [vmem:[%s898_s3] sm:$0xff]  ;;  %v363_v55 = vld [vmem:[%s898_s3 + $0x10] sm:$0xff]  ;;  %v364_v56 = vld [vmem:[%s898_s3 + $0x18] sm:$0xff]  ;;  %p664_p2 = por %p663_p1, %p662_p0 }
  0x1c   : > { %p660_p13 = pneg %p659_p12 }
  0x1e   : > { %p665_p3 = pnand %p664_p2, %p660_p13 }
  0x1f   : > { %631 = vset.pattern.permute.xlu1 %v706_v4 }
  0x20   : > { %629 = vset.pattern.permute.xlu0 %v706_v4  ;;  %633 = vset.pattern.permute.xlu2 %v706_v4 }
  0x21   : > { %317 = vperm.xlu0 %629, %v278_v0   ;;  %313 = vperm.xlu1 %631, %v277_v1  }
  0x22   : > { %309 = vperm.xlu2 %633, %v276_v2  }
  0x29   : > { %634 = vset.pattern.permute.xlu1 %v705_v3  ;;  %305 = vperm.xlu0 %629, %v275_v5  }
  0x2a   : > { %635 = vset.pattern.permute.xlu2 %v705_v3  ;;  %350 = vperm.xlu1 %634, %v332_v6  }
  0x2b   : > { %281 = vperm.xlu2 %635, %v275_v5  }
  0x31   : > { %636 = vset.pattern.permute.xlu0 %v705_v3 }
  0x32   : > { %345 = vperm.xlu1 %634, %v331_v7   ;;  %335 = vperm.xlu0 %636, %v329_v8  }
  0x33   : > { %340 = vperm.xlu2 %635, %v330_v9  }
  0x3a   : > { %371 = vperm.xlu1 %634, %v365_v10   ;;  %441 = vperm.xlu0 %636, %v435_v11  }
  0x3b   : > { %376 = vperm.xlu2 %635, %v366_v12  }
  0x42   : > { %381 = vperm.xlu1 %634, %v367_v13   ;;  %456 = vperm.xlu0 %636, %v438_v14  }
  0x43   : > { %386 = vperm.xlu2 %635, %v368_v15  }
  0x4a   : > { %446 = vperm.xlu1 %634, %v436_v16  }
  0x4b   : > { %451 = vperm.xlu2 %635, %v437_v17  }
  0x72   : > { %v287_v18 = vpop.permute.xlu2 %286 }
  0x73   : > { %v301_v32 = vmul.f32 %v299_v26, %v287_v18 }
  0x7c   : > { %v310_v21 = vpop.permute.xlu2 %309 }
  0x7d   : > { %v322_v33 = vmul.f32 %v320_v25, %v310_v21 }
  0x7f   : > { %v326_v38 = vadd.f32 %v322_v33, %v301_v32 }
  0x85   : > { %v282_v28 = vpop.permute.xlu2 %281 }
  0x86   : > { %v300_v39 = vmul.f32 %v299_v26, %v282_v28 }
  0x89   : > { %v292_v19 = vpop.permute.xlu1 %291 }
  0x8a   : > { %v297_v20 = vpop.permute.xlu0 %296  ;;  %v302_v40 = vmul.f32 %v299_v26, %v292_v19 }
  0x8b   : > { %v303_v29 = vmul.f32 %v299_v26, %v297_v20 }
  0x8d   : > { %v341_v42 = vpop.permute.xlu2 %340 }
  0x8e   : > { %v354_v46 = vadd.f32 %v341_v42, %v326_v38 }
  0x90   : > { %v358_v51 = vmax.f32 %v354_v46, 0.0 }
  0x93   : > { %v318_v22 = vpop.permute.xlu0 %317  ;;  %v314_v23 = vpop.permute.xlu1 %313 }
  0x94   : > { %v324_v27 = vmul.f32 %v320_v25, %v318_v22  ;;  %v323_v36 = vmul.f32 %v320_v25, %v314_v23 }
  0x95   : > { %v377_v58 = vpop.permute.xlu2 %376 }
  0x96   : > { %v328_v31 = vadd.f32 %v324_v27, %v303_v29  ;;  %v327_v43 = vadd.f32 %v323_v36, %v302_v40 }
  0x9b   : > { %v306_v30 = vpop.permute.xlu0 %305 }
  0x9c   : > { %v351_v34 = vpop.permute.xlu1 %350  ;;  %v321_v41 = vmul.f32 %v320_v25, %v306_v30  ;;  %v473_v25 = vstv %s472_s14 }
  0x9d   : > { %v356_v35 = vadd.f32 %v351_v34, %v328_v31  ;;  %v387_v62 = vpop.permute.xlu2 %386 }
  0x9e   : > { %v325_v48 = vadd.f32 %v321_v41, %v300_v39 }
  0x9f   : > { %v360_v37 = vmax.f32 %v356_v35, 0.0 }
  0xa1   : > { %414 = vmatpush.msra.mxu0 %v360_v37  ;;  %575 = vmatpush.msra.mxu1 %v360_v37 }
  0xa2   : > { %576 = vmatpush.msra.mxu2 %v360_v37  ;;  %577 = vmatpush.msra.mxu3 %v360_v37 }
  0xa4   : > { %v346_v44 = vpop.permute.xlu1 %345  ;;  %v336_v45 = vpop.permute.xlu0 %335 }
  0xa5   : > { %v355_v47 = vadd.f32 %v346_v44, %v327_v43  ;;  %v353_v50 = vadd.f32 %v336_v45, %v325_v48  ;;  %v452_v13 = vpop.permute.xlu2 %451 }
  0xa7   : > { %v359_v49 = vmax.f32 %v355_v47, 0.0  ;;  %v357_v52 = vmax.f32 %v353_v50, 0.0 }
  0xa9   : > { %415 = vmatpush.msra.mxu0 %v359_v49  ;;  %578 = vmatpush.msra.mxu1 %v359_v49 }
  0xaa   : > { %579 = vmatpush.msra.mxu2 %v359_v49  ;;  %580 = vmatpush.msra.mxu3 %v359_v49 }
  0xab   : > { %416 = vmatpush.msra.mxu0 %v358_v51  ;;  %581 = vmatpush.msra.mxu1 %v358_v51 }
  0xac   : > { %582 = vmatpush.msra.mxu2 %v358_v51  ;;  %583 = vmatpush.msra.mxu3 %v358_v51  ;;  %v372_v57 = vpop.permute.xlu1 %371  ;;  %v442_v1 = vpop.permute.xlu0 %441 }
  0xad   : > { %417 = vmatpush.msra.mxu0 %v357_v52  ;;  %584 = vmatpush.msra.mxu1 %v357_v52 }
  0xae   : > { %585 = vmatpush.msra.mxu2 %v357_v52  ;;  %586 = vmatpush.msra.mxu3 %v357_v52 }
  0xaf   : > { %568 = vmatmul.msk.f32.vlgmr.msra.gmra.mxu0 %vm389_vm0, %v361_v53  ;;  %569 = vmatmul.msk.f32.vlgmr.msra.gmra.mxu1 %vm389_vm0, %v362_v54 }
  0xb0   : > { %570 = vmatmul.msk.f32.vlgmr.msra.gmra.mxu2 %vm389_vm0, %v363_v55  ;;  %571 = vmatmul.msk.f32.vlgmr.msra.gmra.mxu3 %vm389_vm0, %v364_v56 }
  0xb4   : > { %v382_v59 = vpop.permute.xlu1 %381  ;;  %v457_v16 = vpop.permute.xlu0 %456 }
  0xbc   : > { %v447_v4 = vpop.permute.xlu1 %446 }
 0x12c   : > { %v419_v60 = vpop.f32.mrf.mxu0  ;;  %v422_v61 = vpop.f32.mrf.mxu1 }
 0x12d   : > { %v420_v63 = vadd.f32 %v419_v60, %v372_v57  ;;  %v423_v0 = vadd.f32 %v422_v61, %v377_v58 }
 0x12f   : > { %v431_v2 = vmax.f32 %v420_v63, 0.0  ;;  %v432_v3 = vmax.f32 %v423_v0, 0.0 }
 0x131   : > { %v459_v7 = vmul.f32 %v442_v1, %v431_v2  ;;  %v460_v8 = vmul.f32 %v447_v4, %v432_v3 }
 0x133   : > { %v425_v5 = vpop.f32.mrf.mxu2  ;;  %v428_v6 = vpop.f32.mrf.mxu3  ;;  %v463_v14 = vadd.f32 %v460_v8, %v459_v7 }
 0x134   : > { %v426_v9 = vadd.f32 %v425_v5, %v382_v59  ;;  %v429_v10 = vadd.f32 %v428_v6, %v387_v62 }
 0x136   : > { %v433_v11 = vmax.f32 %v426_v9, 0.0  ;;  %v434_v12 = vmax.f32 %v429_v10, 0.0 }
 0x138   : > { %v461_v15 = vmul.f32 %v452_v13, %v433_v11  ;;  %v462_v18 = vmul.f32 %v457_v16, %v434_v12 }
 0x13a   : > { %v464_v17 = vadd.f32 %v463_v14, %v461_v15 }
 0x13c   : > { %v465_v19 = vadd.f32 %v464_v17, %v462_v18 }
 0x13e   : > { %v466_v20 = vrot.slane %v465_v19, 4 }
 0x140   : > { %v467_v21 = vadd.f32 %v466_v20, %v465_v19 }
 0x142   : > { %v468_v22 = vrot.slane %v467_v21, 2 }
 0x144   : > { %v469_v23 = vadd.f32 %v468_v22, %v467_v21 }
 0x146   : > { %v470_v24 = vrot.slane %v469_v23, 1 }
 0x148   : > { %v471_v26 = vadd.f32 %v470_v24, %v469_v23 }
 0x14a   : > { %v474_v27 = vadd.f32 %v473_v25, %v471_v26 }
 0x14c   : > { %v572_v28 = vmul.f32 -1.442695, %v474_v27 }
 0x14e   : > { %637 = vpow2.f32 %v572_v28 }
 0x154   : > { %v638_v29 = vpop.eup %637 }
 0x155   : > { %v478_v30 = vadd.f32 1.0, %v638_v29 }
 0x157   : > { %639 = vrcp.f32 %v478_v30  ;;  %v490_v34 = vand.u32 2147483648, %v478_v30  ;;  %v488_v36 = vand.u32 2147483647, %v478_v30  ;;  %vm484_vm2 = vweird.f32 %v478_v30 }
 0x159   : > { %v491_v38 = vor.u32 1.1754944e-38, %v490_v34  ;;  %vm489_vm4 = vcmp.eq.f32.partialorder %v488_v36, 8.507059e+37 }
 0x15d   : > { %v640_v31 = vpop.eup %639 }
 0x15e   : > { %v480_v32 = vmul.f32 %v640_v31, %v478_v30  ;;  %vm485_vm1 = vweird.f32 %v640_v31 }
 0x15f   : > { %vm486_vm3 = vmor %vm484_vm2, %vm485_vm1 }
 0x160   : > { %v481_v33 = vsub.f32 1.0, %v480_v32 }
 0x162   : > { %v482_v35 = vmul.f32 %v640_v31, %v481_v33 }
 0x164   : > { %v483_v37 = vadd.f32 %v640_v31, %v482_v35 }
 0x166   : > { %v487_v39 = vsel %vm486_vm3, %v640_v31, %v483_v37 }
 0x167   : > { %v492_v40 = vsel %vm489_vm4, %v491_v38, %v487_v39 }
 0x168   : > { %494 = vst [vmem:[%s269_s19] sm:$0x1] %v492_v40 }
 0x169   : > { %668 = shalt.err (!%p665_p3)
}
 0x16a   : > { %587 = dma.vmem_to_hbm [thread:$0]  (%p788_p5), %s507_s20, 16, %s509_s21, %s496_s22  }
 0x16b PF: > { %p593_p4 = scmp.ge.s32.totalorder %s703_s29, 2  ;;  %s520_s14 = sand.u32 1, %s691_s26  }
 0x16c   : > { %s521_s15 = scalar_lea.sflag [#allocation4], %s520_s14 }
 0x16d   : > { %p590_p7 = pnand %p593_p4, %p792_p6 }
 0x16f   : > { %p591_p8 = pneg %p590_p7 }
 0x171   : > { %686 = dma.done.wait (%p591_p8), %s521_s15, 16  }
 0x172   : > { %688 = vsyncadd (%p591_p8), %s521_s15, 4294967280  ;;  %p18_p9 = scmp.ge.s32.totalorder %s775_s8, 4   ;;  %s905_s26 = smov %s695_s27 }
 0x173   : > { %s906_s27 = smov %s699_s28  ;;  %s907_s28 = smov %s786_s11 }
 0x174   : > { %s908_s29 = smov %s775_s8  ;;  %20 = sbr.rel (!%p18_p9) target bundleno = 5 (0x5), region = 83 }
 0x179   :  { %526 = vsyncpa [#allocation4], 1 }
 0x17a   :  { %528 = vsyncpa [#allocation4 + $0x1], 1 }

</bundles_post_ra>
